<compile_context>
chip_gen: v6e
topology: v6e:2x2x1
jax: 0.10.0
libtpu: 0.0.40
codegen_flags: <defaults>
</compile_context>

<pallas_src>
import functools
import math

import jax
import jax.numpy as jnp
from jax import lax
from jax.experimental import pallas as pl
from jax.experimental.pallas import tpu as pltpu


# ---------------------------------------------------------------------------
# Fused MHA kernel (one grid step == one batch element, all heads)
# ---------------------------------------------------------------------------

def _fused_mha_kernel(x_ref, w_in_ref, w_out_ref, b_ref, o_ref, *,
                      seq_len, num_heads, head_dim, scale):
    L, H, d = seq_len, num_heads, head_dim
    E = H * d

    x = x_ref[...]                                     # (L, E) bf16

    # --- QKV projection: x @ W_in^T + b_in.  W_in is (3E, E), untransposed;
    #     the transpose lives in dot_general dimension_numbers (MXU-native).
    #     bf16 operands, f32 accumulation.
    qkv = lax.dot_general(
        x, w_in_ref[...],
        dimension_numbers=(((1,), (1,)), ((), ())),
        preferred_element_type=jnp.float32,
    ) + b_ref[:, :3 * E]                               # (L, 3E) f32

    # Single full-width scale on Q, then split heads once (E -> (H, d)).
    q = (qkv[:, :E] * scale).reshape(L, H, d).astype(jnp.bfloat16)
    k = qkv[:, E:2 * E].reshape(L, H, d).astype(jnp.bfloat16)
    v = qkv[:, 2 * E:].reshape(L, H, d).astype(jnp.bfloat16)

    # --- Attention, all heads in one batched MXU matmul (batch dim = h).
    s = jnp.einsum('lhd,mhd->hlm', q, k,
                   preferred_element_type=jnp.float32)             # (H, L, L)

    # Softmax in f32, exact normalization.
    m = jnp.max(s, axis=-1, keepdims=True)
    p = jnp.exp(s - m)
    p = p / jnp.sum(p, axis=-1, keepdims=True)

    attn = jnp.einsum('hlm,mhd->lhd', p.astype(jnp.bfloat16), v,
                      preferred_element_type=jnp.float32)           # (L, H, d)
    attn = attn.reshape(L, E).astype(jnp.bfloat16)     # merged heads, in registers

    # --- Output projection: attn @ W_out^T + b_out.
    out = lax.dot_general(
        attn, w_out_ref[...],
        dimension_numbers=(((1,), (1,)), ((), ())),
        preferred_element_type=jnp.float32,
    ) + b_ref[:, 3 * E:]
    o_ref[...] = out.astype(o_ref.dtype)


def multihead_attention(x, in_proj_w, in_proj_b, out_proj_w, out_proj_b, num_heads):
    """Replicates nn.MultiheadAttention(E, H, dropout=0.0)(x, x, x)[0], x: (L, N, E)."""
    L, N, E = x.shape
    d = E // num_heads
    scale = 1.0 / math.sqrt(d)

    # Layout plumbing outside the kernel:
    #  (L, N, E) -> batch-first (N, L, E); matmul operands cast to bf16 (halves
    #  their DMA bytes, full MXU rate); both biases packed into one operand.
    x_nle = jnp.transpose(x, (1, 0, 2)).astype(jnp.bfloat16)        # (N, L, E)
    w_in = in_proj_w.astype(jnp.bfloat16)                           # (3E, E)
    w_out = out_proj_w.astype(jnp.bfloat16)                         # (E, E)
    b_cat = jnp.concatenate([in_proj_b, out_proj_b]).reshape(1, 4 * E)
    b_cat = b_cat.astype(jnp.float32)                               # (1, 4E)

    kernel = functools.partial(
        _fused_mha_kernel, seq_len=L, num_heads=num_heads, head_dim=d, scale=scale)

    out_nle = pl.pallas_call(
        kernel,
        out_shape=jax.ShapeDtypeStruct((N, L, E), x.dtype),
        grid_spec=pltpu.PrefetchScalarGridSpec(
            num_scalar_prefetch=0,
            grid=(N,),                                              # one step / batch elt
            in_specs=[
                pl.BlockSpec((None, L, E), lambda n: (n, 0, 0)),    # x rows of batch n
                pl.BlockSpec((3 * E, E), lambda n: (0, 0)),         # W_in (resident)
                pl.BlockSpec((E, E), lambda n: (0, 0)),             # W_out (resident)
                pl.BlockSpec((1, 4 * E), lambda n: (0, 0)),         # biases (resident)
            ],
            out_specs=pl.BlockSpec((None, L, E), lambda n: (n, 0, 0)),
        ),
        compiler_params=pltpu.CompilerParams(
            dimension_semantics=("parallel",)),    # shard batch across v7x's 2 TCs
    )(x_nle, w_in, w_out, b_cat)

    # Back to PyTorch's (L, N, E) layout.
    return jnp.transpose(out_nle, (1, 0, 2))


# ---------------------------------------------------------------------------
# Pure-JAX reference (for correctness check)
# ---------------------------------------------------------------------------

def ref_mha(x, in_proj_w, in_proj_b, out_proj_w, out_proj_b, num_heads):
    L, N, E = x.shape
    d = E // num_heads
    qkv = x @ in_proj_w.T + in_proj_b
    q, k, v = jnp.split(qkv, 3, axis=-1)
    q = q.reshape(L, N * num_heads, d).transpose(1, 0, 2)
    k = k.reshape(L, N * num_heads, d).transpose(1, 0, 2)
    v = v.reshape(L, N * num_heads, d).transpose(1, 0, 2)
    s = jnp.einsum("bld,bmd->blm", q, k) / math.sqrt(d)
    p = jax.nn.softmax(s, axis=-1)
    o = jnp.einsum("blm,bmd->bld", p, v)
    o = o.transpose(1, 0, 2).reshape(L, N, E)
    return o @ out_proj_w.T + out_proj_b


# ---------------------------------------------------------------------------
# Main
# ---------------------------------------------------------------------------

if __name__ == "__main__":
    # Small shapes consistent with the module (emb_dim divisible by num_heads).
    L, N, E, H = 8, 2, 32, 4

    key = jax.random.PRNGKey(0)
    k1, k2, k3, k4, k5 = jax.random.split(key, 5)

    x = jax.random.normal(k1, (L, N, E), jnp.float32)
    in_proj_w = jax.random.normal(k2, (3 * E, E), jnp.float32) * 0.05   # in_proj_weight
    in_proj_b = jax.random.normal(k3, (3 * E,), jnp.float32) * 0.05     # in_proj_bias
    out_proj_w = jax.random.normal(k4, (E, E), jnp.float32) * 0.05      # out_proj.weight
    out_proj_b = jax.random.normal(k5, (E,), jnp.float32) * 0.05        # out_proj.bias

    y = multihead_attention(x, in_proj_w, in_proj_b, out_proj_w, out_proj_b, H)
    y = jax.block_until_ready(y)

    y_ref = ref_mha(x, in_proj_w, in_proj_b, out_proj_w, out_proj_b, H)
    assert y.shape == (L, N, E)
    # Tolerance accounts for bf16 MXU operands (f32 accumulation); softmax and
    # normalization are exact f32.
    assert jnp.allclose(y, y_ref, atol=2e-2, rtol=2e-2), "mismatch vs. reference"

    # TODO(synk): attention mask / key-padding-mask / dropout>0 paths of
    # nn.MultiheadAttention are not implemented (module uses dropout=0.0,
    # unmasked self-attention).
    print("KERNEL_OK")
</pallas_src>

<mosaic_0001>
module attributes {stable_mosaic.version = 11 : i64} {
  func.func @_fused_mha_kernel(%arg0: i32, %arg1: memref<1x8x32xbf16, #tpu.memory_space<vmem>>, %arg2: memref<96x32xbf16, #tpu.memory_space<vmem>>, %arg3: memref<32x32xbf16, #tpu.memory_space<vmem>>, %arg4: memref<1x128xf32, #tpu.memory_space<vmem>>, %arg5: memref<1x8x32xf32, #tpu.memory_space<vmem>>) attributes {dimension_semantics = [#tpu.dimension_semantics<parallel>], iteration_bounds = array<i64: 2>, scalar_prefetch = 0 : i64, scratch_operands = 0 : i64, tpu.core_type = #tpu.core_type<tc>, window_params = [{transform_indices = @transform_0, window_bounds = array<i64: 1, 8, 32>}, {pipeline_mode = #tpu.pipeline_mode<synchronous>, transform_indices = @transform_1, window_bounds = array<i64: 96, 32>}, {pipeline_mode = #tpu.pipeline_mode<synchronous>, transform_indices = @transform_2, window_bounds = array<i64: 32, 32>}, {pipeline_mode = #tpu.pipeline_mode<synchronous>, transform_indices = @transform_3, window_bounds = array<i64: 1, 128>}, {transform_indices = @transform_4, window_bounds = array<i64: 1, 8, 32>}]} {
    %c0 = arith.constant 0 : index
    %c0_0 = arith.constant 0 : index
    %c0_1 = arith.constant 0 : index
    %0 = vector.load %arg1[%c0, %c0_0, %c0_1] : memref<1x8x32xbf16, #tpu.memory_space<vmem>>, vector<1x8x32xbf16>
    %1 = vector.shape_cast %0 : vector<1x8x32xbf16> to vector<8x32xbf16>
    %c0_2 = arith.constant 0 : index
    %c0_3 = arith.constant 0 : index
    %2 = vector.load %arg2[%c0_2, %c0_3] : memref<96x32xbf16, #tpu.memory_space<vmem>>, vector<96x32xbf16>
    %cst = arith.constant dense<0.000000e+00> : vector<8x96xf32>
    %3 = tpu.matmul %1, %2, %cst {dimension_numbers = #tpu.dot_dimension_numbers<[1], [1], [0], [0], [0, 0, 1, 0], [], []>} : vector<8x32xbf16>, vector<96x32xbf16>, vector<8x96xf32> -> vector<8x96xf32>
    %c0_4 = arith.constant 0 : index
    %c0_5 = arith.constant 0 : index
    %4 = vector.load %arg4[%c0_4, %c0_5] : memref<1x128xf32, #tpu.memory_space<vmem>>, vector<1x96xf32>
    %5 = vector.broadcast %4 : vector<1x96xf32> to vector<8x96xf32>
    %6 = arith.addf %3, %5 : vector<8x96xf32>
    %7 = vector.extract_strided_slice %6 {offsets = [0, 0], sizes = [8, 32], strides = [1, 1]} : vector<8x96xf32> to vector<8x32xf32>
    %cst_6 = arith.constant 0.353553385 : f32
    %8 = vector.broadcast %cst_6 : f32 to vector<8x32xf32>
    %9 = arith.mulf %7, %8 : vector<8x32xf32>
    %10 = vector.shape_cast %9 : vector<8x32xf32> to vector<8x4x8xf32>
    %11 = arith.truncf %10 : vector<8x4x8xf32> to vector<8x4x8xbf16>
    %12 = vector.extract_strided_slice %6 {offsets = [0, 32], sizes = [8, 32], strides = [1, 1]} : vector<8x96xf32> to vector<8x32xf32>
    %13 = vector.shape_cast %12 : vector<8x32xf32> to vector<8x4x8xf32>
    %14 = arith.truncf %13 : vector<8x4x8xf32> to vector<8x4x8xbf16>
    %15 = vector.extract_strided_slice %6 {offsets = [0, 64], sizes = [8, 32], strides = [1, 1]} : vector<8x96xf32> to vector<8x32xf32>
    %16 = vector.shape_cast %15 : vector<8x32xf32> to vector<8x4x8xf32>
    %17 = arith.truncf %16 : vector<8x4x8xf32> to vector<8x4x8xbf16>
    "tpu.trace_start"() <{level = 10 : i32, message = "lhd,mhd->hlm"}> : () -> ()
    %cst_7 = arith.constant dense<0.000000e+00> : vector<4x8x8xf32>
    %18 = tpu.matmul %11, %14, %cst_7 {dimension_numbers = #tpu.dot_dimension_numbers<[2], [2], [0], [0], [0, 1, 0, 0, 1, 0], [1], [1]>} : vector<8x4x8xbf16>, vector<8x4x8xbf16>, vector<4x8x8xf32> -> vector<4x8x8xf32>
    "tpu.trace_stop"() : () -> ()
    %cst_8 = arith.constant dense<0xFF800000> : vector<4x8xf32>
    %19 = vector.multi_reduction <maximumf>, %18, %cst_8 [2] : vector<4x8x8xf32> to vector<4x8xf32>
    %20 = vector.shape_cast %19 : vector<4x8xf32> to vector<4x8x1xf32>
    %21 = vector.broadcast %20 : vector<4x8x1xf32> to vector<4x8x8xf32>
    %22 = arith.subf %18, %21 : vector<4x8x8xf32>
    %23 = math.exp %22 : vector<4x8x8xf32>
    %cst_9 = arith.constant dense<0.000000e+00> : vector<4x8xf32>
    %24 = vector.multi_reduction <add>, %23, %cst_9 [2] : vector<4x8x8xf32> to vector<4x8xf32>
    %25 = vector.shape_cast %24 : vector<4x8xf32> to vector<4x8x1xf32>
    %26 = vector.broadcast %25 : vector<4x8x1xf32> to vector<4x8x8xf32>
    %27 = arith.divf %23, %26 : vector<4x8x8xf32>
    %28 = arith.truncf %27 : vector<4x8x8xf32> to vector<4x8x8xbf16>
    "tpu.trace_start"() <{level = 10 : i32, message = "hlm,mhd->lhd"}> : () -> ()
    %cst_10 = arith.constant dense<0.000000e+00> : vector<4x8x8xf32>
    %29 = tpu.matmul %17, %28, %cst_10 {dimension_numbers = #tpu.dot_dimension_numbers<[0], [2], [2], [1], [0, 1, 0, 2, 1, 1], [1], [0]>} : vector<8x4x8xbf16>, vector<4x8x8xbf16>, vector<4x8x8xf32> -> vector<4x8x8xf32>
    %30 = tpu.transpose %29, [2, 0, 1] : vector<4x8x8xf32> -> vector<8x4x8xf32>
    "tpu.trace_stop"() : () -> ()
    %31 = vector.shape_cast %30 : vector<8x4x8xf32> to vector<8x32xf32>
    %32 = arith.truncf %31 : vector<8x32xf32> to vector<8x32xbf16>
    %c0_11 = arith.constant 0 : index
    %c0_12 = arith.constant 0 : index
    %33 = vector.load %arg3[%c0_11, %c0_12] : memref<32x32xbf16, #tpu.memory_space<vmem>>, vector<32x32xbf16>
    %cst_13 = arith.constant dense<0.000000e+00> : vector<8x32xf32>
    %34 = tpu.matmul %32, %33, %cst_13 {dimension_numbers = #tpu.dot_dimension_numbers<[1], [1], [0], [0], [0, 0, 1, 0], [], []>} : vector<8x32xbf16>, vector<32x32xbf16>, vector<8x32xf32> -> vector<8x32xf32>
    %c0_14 = arith.constant 0 : index
    %c96 = arith.constant 96 : index
    %35 = vector.load %arg4[%c0_14, %c96] : memref<1x128xf32, #tpu.memory_space<vmem>>, vector<1x32xf32>
    %36 = vector.broadcast %35 : vector<1x32xf32> to vector<8x32xf32>
    %37 = arith.addf %34, %36 : vector<8x32xf32>
    %c0_15 = arith.constant 0 : index
    %c0_16 = arith.constant 0 : index
    %c0_17 = arith.constant 0 : index
    %38 = vector.load %arg5[%c0_15, %c0_16, %c0_17] : memref<1x8x32xf32, #tpu.memory_space<vmem>>, vector<1x8x32xf32>
    %39 = vector.shape_cast %38 : vector<1x8x32xf32> to vector<8x32xf32>
    %40 = vector.shape_cast %37 : vector<8x32xf32> to vector<1x8x32xf32>
    tpu.vector_store %arg5[%c0_15, %c0_16, %c0_17], %40 {strides = array<i32>} : memref<1x8x32xf32, #tpu.memory_space<vmem>>, vector<1x8x32xf32>,
    return
  }
  func.func @transform_0(%arg0: i32) -> (i32, i32, i32) {
    %c0_i32 = arith.constant 0 : i32
    %c0_i32_0 = arith.constant 0 : i32
    %c0_i32_1 = arith.constant 0 : i32
    return %arg0, %c0_i32, %c0_i32_0 : i32, i32, i32
  }
  func.func @transform_1(%arg0: i32) -> (i32, i32) {
    %c0_i32 = arith.constant 0 : i32
    %c0_i32_0 = arith.constant 0 : i32
    %c0_i32_1 = arith.constant 0 : i32
    return %c0_i32, %c0_i32_0 : i32, i32
  }
  func.func @transform_2(%arg0: i32) -> (i32, i32) {
    %c0_i32 = arith.constant 0 : i32
    %c0_i32_0 = arith.constant 0 : i32
    %c0_i32_1 = arith.constant 0 : i32
    return %c0_i32, %c0_i32_0 : i32, i32
  }
  func.func @transform_3(%arg0: i32) -> (i32, i32) {
    %c0_i32 = arith.constant 0 : i32
    %c0_i32_0 = arith.constant 0 : i32
    %c0_i32_1 = arith.constant 0 : i32
    return %c0_i32, %c0_i32_0 : i32, i32
  }
  func.func @transform_4(%arg0: i32) -> (i32, i32, i32) {
    %c0_i32 = arith.constant 0 : i32
    %c0_i32_0 = arith.constant 0 : i32
    %c0_i32_1 = arith.constant 0 : i32
    return %arg0, %c0_i32, %c0_i32_0 : i32, i32, i32
  }
}

</mosaic_0001>

<bundles_post_ra>
// kernel: tpu_custom_call.1
= control target key start
LH: loop header
LB: loop body
LE: loop exit
PB: predicated region body
PF: predicated region fallthrough
CT: control target
= control target key end

     0   :  { %9 = vsyncpa [#allocation3], 0  ;;  %s2995_s0 = inlined_call_operand.vmem [shape: bf16[2,8,32], index: 0, kind: input, shape index: {}]   ;;  %s2996_s1 = inlined_call_operand.vmem [shape: bf16[96,32], index: 1, kind: input, shape index: {}]   ;;  %s2997_s2 = inlined_call_operand.vmem [shape: bf16[32,32], index: 2, kind: input, shape index: {}]   ;;  %s2998_s3 = inlined_call_operand.vmem [shape: f32[1,128], index: 3, kind: input, shape index: {}]   ;;  %s2999_s4 = inlined_call_operand.hbm [shape: f32[2,8,32], index: 4, kind: output, shape index: {}]  }
   0x1   :  { %11 = vsyncpa [#allocation3 + $0x1], 0  ;;  %s2633_s15 = smov 0   ;;  %s2635_s16 = smov 0  }
   0x2   :  { %s2637_s17 = smov 0   ;;  %s2639_s18 = smov 0  }
   0x3 LB: > { %s2654_s19 = sadd.s32 4294967295, %s2591_s18   ;;  %s2320_s20 = sadd.s32 4294967294, %s2591_s18   ;;  %s2591_s18 = sphi %s2639_s18, %s3005_s18   ;;  %s2587_s17 = sphi %s2637_s17, %s3004_s17   ;;  %s2583_s16 = sphi %s2635_s16, %s3003_s16   ;;  %s2579_s15 = sphi %s2633_s15, %s3002_s15  }
   0x4   : > { %s2658_s21 = sadd.s32 1, %s2591_s18   ;;  %s113_s22 = sadd.s32 1, %s2587_s17 }
   0x5   : > { %s110_s23 = ssub.s32 %s2591_s18, %s2658_s21  ;;  %p123_p0 = scmp.ne.s32.totalorder %s2587_s17, %s2583_s16 }
   0x6   : > { %p111_p1 = scmp.eq.s32.totalorder %s110_s23, 0  ;;  %p124_p2 = scmp.eq.s32.totalorder %s2654_s19, 1 }
   0x7   : > { %p129_p3 = scmp.ne.s32.totalorder %s2583_s16, %s2579_s15  ;;  %p130_p4 = scmp.eq.s32.totalorder %s2320_s20, 1 }
   0x8   : > { %s2669_s24 = scalar_select %p111_p1, %s2587_s17, %s113_s22  }
   0x9   : > { %p2671_p5 = por %p124_p2, %p123_p0  ;;  %p2675_p6 = por %p130_p4, %p129_p3 }
   0xa   : > { %p2323_p7 = scmp.ge.s32.totalorder %s2591_s18, 1  ;;  %p164_p8 = scmp.lt.s32.totalorder %s2591_s18, 3 }
   0xc   : > { %p165_p9 = pnand %p2323_p7, %p164_p8 }
   0xd   : > { %p189_p10 = scmp.lt.s32.totalorder (!%p165_p9), %s2654_s19, 1  ;;  %s2595_s29 = smov (!%p165_p9), 104  }
   0xe   : > { %168 = sbr.rel (%p165_p9) target bundleno = 2009 (0x7d9), region = 36  ;;  %s2596_s30 = smov (!%p165_p9), 120  }
   0xf   : > { %s2597_s5 = smov (!%p165_p9), 96   ;;  %s2598_s6 = smov (!%p165_p9), 112  }
  0x10   : > { %s2602_s7 = smov (!%p165_p9), 64   ;;  %s2603_s12 = smov (!%p165_p9), 16  }
  0x11   : > { %s186_s27 = sand.u32 (!%p165_p9), 1, %s2583_s16   ;;  %s2607_s10 = smov (!%p165_p9), [#allocation2]  }
  0x12   : > { %s2324_s28 = sshll.u32 (!%p165_p9), %s186_s27, 3  ;;  %s2248_s9 = scalar_lea.sflag (!%p165_p9), [#allocation3], %s186_s27 }
  0x13   : > { %v2507_v0 = vld [vmem:[%s2996_s1 + $0x28] sm:$0xff]   ;;  %v2593_v1 = vmov 0.0   ;;  %vm244_vm0 = vcmask 261120   ;;  %v2508_v3 = vld [vmem:[%s2996_s1 + $0x20] sm:$0xff]   ;;  %vm2594_vm1 = vmmov 0   ;;  %v2509_v5 = vld [vmem:[%s2996_s1 + $0x18] sm:$0xff]   ;;  %v322_v25 = vlaneseq }
  0x14   : > { %2382 = vmatprep.subr.bf16.mxu0 %v2593_v1  ;;  %2404 = vmatprep.subr.bf16.mxu1 %v2593_v1  ;;  %v264_v2 = vsel %vm244_vm0, %v2507_v0, 0  ;;  %v261_v4 = vsel %vm244_vm0, %v2508_v3, 0  ;;  %v258_v6 = vsel %vm244_vm0, %v2509_v5, 0  ;;  %v2510_v7 = vld [vmem:[%s2996_s1 + $0x10] sm:$0xff]   ;;  %v2511_v9 = vld [vmem:[%s2996_s1 + $0x8] sm:$0xff]   ;;  %v2512_v11 = vld [vmem:[%s2996_s1] sm:$0xff]  }
  0x15   : > { %2383 = vmatpush3.bf16.xpose.msra.mxu0 %v264_v2  ;;  %2394 = vmatprep.mubr.msk.bf16.mxu0 %vm2594_vm1, %v2593_v1  ;;  %v255_v8 = vsel %vm244_vm0, %v2510_v7, 0  ;;  %v252_v10 = vsel %vm244_vm0, %v2511_v9, 0  ;;  %s190_s13 = scalar_select %p189_p10, %s2654_s19, 1  ;;  %v249_v12 = vsel %vm244_vm0, %v2512_v11, 0  ;;  %v2326_v14 = vld [vmem:[%s2998_s3] ss:$0 sm:$0xff] }
  0x16   : > { %2384 = vmatprep.subr.bf16.mxu0 %v2593_v1  ;;  %2406 = vmatprep.mubr.msk.bf16.mxu1 %vm2594_vm1, %v2593_v1  ;;  %v2599_v23 = vmov 1983009808   ;;  %v2600_v26 = vmov 1934713408   ;;  %v323_v29 = vshrl.u32 %v322_v25, 7  ;;  %vm1060_vm2 = vcmask 1043456  }
  0x17   : > { %s2325_s14 = sshll.u32 %s190_s13, 2  ;;  %v320_v24 = vunpack.c.l.s4 %v2599_v23  ;;  %v352_v27 = vunpack.c.l.s4 %v2600_v26  ;;  %vm1056_vm3 = vcmask 64512   ;;  %s2604_s13 = smov 8   ;;  %vm2169_vm4 = vcmask 130048  }
  0x18   : > { %s192_s23 = scalar_lea.vmem %s2995_s0, %s2325_s14  ;;  %s2605_s14 = smov 24   ;;  %vm2171_vm5 = vcmask 195584  }
  0x19   : > { %v194_v13 = vld [vmem:[%s192_s23] sm:$0xf]  ;;  %v321_v28 = vunpack.c.0.s8 %v320_v24  ;;  %v353_v32 = vunpack.c.0.s8 %v352_v27  ;;  %s2606_s23 = smov 32   ;;  %s2535_s11 = sshll.u32 %s2607_s10, 4  ;;  %s2536_s11 = int_to_ptr.vmem [resolvable:$false] %s2535_s11 }
  0x1b   : > { %v2746_v33 = vsub.s32 %v321_v28, %v323_v29  ;;  %v2748_v40 = vsub.s32 %v353_v32, %v323_v29 }
  0x1d   : > { %2385 = vmatpush3.bf16.xpose.msra.mxu0 %v261_v4 }
  0x1e   : > { %2386 = vmatprep.subr.bf16.mxu0 %v2593_v1 }
  0x25   : > { %2387 = vmatpush3.bf16.xpose.msra.mxu0 %v258_v6 }
  0x26   : > { %2388 = vmatprep.subr.bf16.mxu0 %v2593_v1 }
  0x2d   : > { %2389 = vmatpush3.bf16.xpose.msra.mxu0 %v255_v8 }
  0x2e   : > { %2390 = vmatprep.subr.bf16.mxu0 %v2593_v1 }
  0x35   : > { %2391 = vmatpush3.bf16.xpose.msra.mxu0 %v252_v10 }
  0x36   : > { %2392 = vmatprep.subr.bf16.mxu0 %v2593_v1 }
  0x3d   : > { %2393 = vmatpush3.bf16.xpose.msra.mxu0 %v249_v12 }
  0x3e   : > { %2398 = vmatprep.subr.bf16.mxu0 %v2593_v1 }
  0x44   : > { %2395 = vmatmul.mubr.msk.bf16.vlgmr.msra.gmra.mxu0 %vm244_vm0, %v194_v13 }
  0x45   : > { %2400 = vmatprep.mubr.msk.bf16.mxu0 %vm2594_vm1, %v2593_v1 }
 0x104   : > { %v300_v15 = vpop.f32.mrf.mxu0 }
 0x105   : > { %v2728_v16 = vadd.f32 %v2326_v14, %v300_v15 }
 0x106   : > { %v2396_v17 = vpop.f32.mrf.mxu0 }
 0x107   : > { %398 = vrot.lane.b32.xlu1 %v2728_v16, %s2595_s29  ;;  %394 = vrot.lane.b32.xlu0 %v2728_v16, %s2596_s30  ;;  %v2763_v2 = vmul.f32 0.35355338, %v2728_v16 }
 0x108   : > { %v303_v18 = vpop.f32.mrf.mxu0 }
 0x10a   : > { %v2397_v19 = vpop.f32.mrf.mxu0 }
 0x10b   : > { %400 = vrot.lane.b32.xlu1 %v2728_v16, %s2597_s5  ;;  %396 = vrot.lane.b32.xlu0 %v2728_v16, %s2598_s6 }
 0x179   : > { %v2737_v20 = vpop.permute.xlu0 %394  ;;  %v2740_v21 = vpop.permute.xlu1 %398 }
 0x17a   : > { %402 = vrot.lane.b32.xlu0 %v2737_v20, %s2597_s5 }
 0x17d   : > { %v2742_v22 = vpop.permute.xlu0 %396  ;;  %v401_v30 = vpop.permute.xlu1 %400 }
 0x17e   : > { %406 = vrot.lane.b32.xlu0 %v2740_v21, %s2597_s5  ;;  %404 = vrot.lane.b32.xlu1 %v2742_v22, %s2597_s5 }
 0x1ec   : > { %v403_v31 = vpop.permute.xlu0 %402 }
 0x1f0   : > { %v405_v34 = vpop.permute.xlu1 %404  ;;  %v407_v35 = vpop.permute.xlu0 %406 }
 0x1f1   : > { %v412_v36 = vcombine.low %v401_v30, %v405_v34  ;;  %v413_v37 = vcombine.high %v401_v30, %v405_v34  ;;  %v428_v38 = vcombine.low %v403_v31, %v407_v35  ;;  %v429_v39 = vcombine.high %v403_v31, %v407_v35 }
 0x1f2   : > { %v2601_v35 = vmov 0  }
 0x1f3   : > { %v420_v41 = vrot.slane %v412_v36, %v2746_v33  ;;  %v427_v42 = vrot.slane %v413_v37, %v2746_v33  ;;  %v436_v43 = vrot.slane %v428_v38, %v2746_v33  ;;  %v443_v44 = vrot.slane %v429_v39, %v2746_v33 }
 0x1f5   : > { %v445_v45 = vcombine.high %v420_v41, %v436_v43  ;;  %v444_v46 = vcombine.low %v420_v41, %v436_v43  ;;  %v460_v47 = vcombine.low %v427_v42, %v443_v44  ;;  %v461_v50 = vcombine.high %v427_v42, %v443_v44 }
 0x1f7   : > { %v459_v48 = vrot.slane %v445_v45, %v2748_v40  ;;  %v452_v49 = vrot.slane %v444_v46, %v2748_v40  ;;  %v468_v53 = vrot.slane %v460_v47, %v2748_v40  ;;  %v475_v57 = vrot.slane %v461_v50, %v2748_v40 }
 0x1f9   : > { %v482_v51 = vpack.c.bf16 %v459_v48, %v459_v48  ;;  %v480_v52 = vpack.c.bf16 %v452_v49, %v452_v49  ;;  %v477_v54 = vcombine.high %v459_v48, %v2593_v1  ;;  %v484_v55 = vpack.c.bf16 %v468_v53, %v468_v53 }
 0x1fa   : > { %v478_v58 = vcombine.high %v468_v53, %v2593_v1  ;;  %v486_v59 = vpack.c.bf16 %v475_v57, %v475_v57  ;;  %v479_v61 = vcombine.high %v475_v57, %v2593_v1  ;;  %v476_v62 = vcombine.high %v452_v49, %v2593_v1 }
 0x1fb   : > { %670 = vxpose.xlu0.c.b16.start.end [1/1] (short) (narrow) %v482_v51, 16  ;;  %638 = vxpose.xlu1.c.b16.start.end [1/1] (short) (narrow) %v480_v52, 16  ;;  %v483_v56 = vpack.c.bf16 %v477_v54, %v477_v54 }
 0x1fc   : > { %v485_v60 = vpack.c.bf16 %v478_v58, %v478_v58  ;;  %v487_v63 = vpack.c.bf16 %v479_v61, %v479_v61  ;;  %v481_v0 = vpack.c.bf16 %v476_v62, %v476_v62 }
 0x1ff   : > { %702 = vxpose.xlu0.c.b16.start.end [1/1] (short) (narrow) %v484_v55, 16  ;;  %686 = vxpose.xlu1.c.b16.start.end [1/1] (short) (narrow) %v483_v56, 16 }
 0x203   : > { %734 = vxpose.xlu0.c.b16.start.end [1/1] (short) (narrow) %v486_v59, 16  ;;  %718 = vxpose.xlu1.c.b16.start.end [1/1] (short) (narrow) %v485_v60, 16 }
 0x207   : > { %750 = vxpose.xlu1.c.b16.start.end [1/1] (short) (narrow) %v487_v63, 16  ;;  %654 = vxpose.xlu0.c.b16.start.end [1/1] (short) (narrow) %v481_v0, 16 }
 0x20b   : > { %311 = vrot.lane.b32.xlu1 %v2763_v2, %s2598_s6 }
 0x20f   : > { %314 = vrot.lane.b32.xlu1 %v2763_v2, %s2595_s29  ;;  %s2353_s29 = sshll.u32 %s2654_s19, 7 }
 0x210   : > { %308 = vrot.lane.b32.xlu0 %v2763_v2, %s2596_s30  ;;  %s188_s30 = scalar_lea.vmem [#allocation2], %s2324_s28  ;;  %s2953_s8 = scalar_lea.hbm %s2999_s4, %s2353_s29 }
 0x211   : > { %s2261_s5 = sshll.u32 %s188_s30, 4  ;;  %s2955_s5 = int_to_ptr.vmem [resolvable:$true] %s2261_s5 }
 0x212   : > { %s2531_s19 = scalar_lea.vmem %s2955_s5, 128  ;;  %p2538_p0 = scmp.lt.s32.totalorder %s2955_s5, %s2536_s11 }
 0x213   : > { %p2532_p11 = scmp.ne.s32.totalorder %s2955_s5, %s2531_s19 }
 0x215   : > { %p2533_p12 = pnand %p2532_p11, %p2671_p5 }
 0x217   : > { %p2534_p13 = pneg %p2533_p12 }
 0x25d   : > { %v678_v3 = vpop.trf.xlu0  ;;  %v646_v4 = vpop.trf.xlu1 }
 0x261   : > { %v710_v5 = vpop.trf.xlu0  ;;  %v694_v6 = vpop.trf.xlu1 }
 0x262   : > { %v766_v9 = vcombine.low %v646_v4, %v710_v5 }
 0x264   : > { %v773_v14 = vrot.slane %v766_v9, %v2746_v33 }
 0x265   : > { %v742_v7 = vpop.trf.xlu0  ;;  %v726_v8 = vpop.trf.xlu1 }
 0x266   : > { %v774_v10 = vcombine.low %v678_v3, %v742_v7 }
 0x268   : > { %v781_v11 = vrot.slane %v774_v10, %v2746_v33 }
 0x269   : > { %v758_v12 = vpop.trf.xlu1  ;;  %v662_v13 = vpop.trf.xlu0 }
 0x26a   : > { %v808_v15 = vcombine.low %v694_v6, %v758_v12  ;;  %v800_v17 = vcombine.low %v662_v13, %v726_v8  ;;  %v782_v18 = vcombine.low %v773_v14, %v781_v11  ;;  %v783_v19 = vcombine.high %v773_v14, %v781_v11 }
 0x26c   : > { %v815_v23 = vrot.slane %v808_v15, %v2746_v33  ;;  %v807_v24 = vrot.slane %v800_v17, %v2746_v33  ;;  %v790_v27 = vrot.slane %v782_v18, %v2748_v40  ;;  %v797_v28 = vrot.slane %v783_v19, %v2748_v40 }
 0x26e   : > { %v816_v25 = vcombine.low %v807_v24, %v815_v23  ;;  %v817_v26 = vcombine.high %v807_v24, %v815_v23  ;;  %v838_v37 = vshrl.u32 %v790_v27, 16  ;;  %v798_v38 = vcombine.high %v790_v27, %v2601_v35 }
 0x26f   : > { %v799_v44 = vcombine.high %v797_v28, %v2601_v35  ;;  %v854_v45 = vshrl.u32 %v797_v28, 16 }
 0x270   : > { %v824_v29 = vrot.slane %v816_v25, %v2748_v40  ;;  %v831_v30 = vrot.slane %v817_v26, %v2748_v40  ;;  %v846_v49 = vshrl.u32 %v798_v38, 16 }
 0x271   : > { %v862_v52 = vshrl.u32 %v799_v44, 16 }
 0x272   : > { %v852_v31 = vpack.i.b16 %v831_v30, %v797_v28  ;;  %v836_v32 = vpack.i.b16 %v824_v29, %v790_v27  ;;  %v839_v34 = vshrl.u32 %v824_v29, 16  ;;  %v832_v36 = vcombine.high %v824_v29, %v2601_v35 }
 0x273   : > { %v833_v42 = vcombine.high %v831_v30, %v2601_v35  ;;  %v855_v43 = vshrl.u32 %v831_v30, 16 }
 0x274   : > { %930 = vxpose.xlu1.c.b16.start.end [1/1] (short) (narrow) %v852_v31, 16  ;;  %866 = vxpose.xlu0.c.b16.start.end [1/1] (short) (narrow) %v836_v32, 16  ;;  %v840_v39 = vpack.i.b16 %v839_v34, %v838_v37  ;;  %v844_v41 = vpack.i.b16 %v832_v36, %v798_v38  ;;  %v847_v48 = vshrl.u32 %v832_v36, 16 }
 0x275   : > { %v860_v46 = vpack.i.b16 %v833_v42, %v799_v44  ;;  %v856_v47 = vpack.i.b16 %v855_v43, %v854_v45  ;;  %v863_v51 = vshrl.u32 %v833_v42, 16 }
 0x276   : > { %v848_v50 = vpack.i.b16 %v847_v48, %v846_v49 }
 0x277   : > { %v864_v53 = vpack.i.b16 %v863_v51, %v862_v52 }
 0x278   : > { %882 = vxpose.xlu1.c.b16.start.end [1/1] (short) (narrow) %v840_v39, 16  ;;  %898 = vxpose.xlu0.c.b16.start.end [1/1] (short) (narrow) %v844_v41, 16 }
 0x27c   : > { %962 = vxpose.xlu1.c.b16.start.end [1/1] (short) (narrow) %v860_v46, 16  ;;  %946 = vxpose.xlu0.c.b16.start.end [1/1] (short) (narrow) %v856_v47, 16 }
 0x27d   : > { %v312_v54 = vpop.permute.xlu1 %311 }
 0x27e   : > { %v317_v59 = vcombine.low %v2763_v2, %v312_v54  ;;  %v318_v60 = vcombine.high %v2763_v2, %v312_v54 }
 0x280   : > { %488 = vrot.lane.b32.xlu1 %v2728_v16, %s2602_s7  ;;  %914 = vxpose.xlu0.c.b16.start.end [1/1] (short) (narrow) %v848_v50, 16  ;;  %v332_v62 = vrot.slane %v318_v60, %v2746_v33 }
 0x281   : > { %v315_v55 = vpop.permute.xlu1 %314 }
 0x282   : > { %v309_v56 = vpop.permute.xlu0 %308 }
 0x283   : > { %v333_v57 = vcombine.low %v309_v56, %v315_v55  ;;  %v334_v58 = vcombine.high %v309_v56, %v315_v55 }
 0x284   : > { %492 = vrot.lane.b32.xlu1 %v2742_v22, %s2602_s7  ;;  %978 = vxpose.xlu0.c.b16.start.end [1/1] (short) (narrow) %v864_v53, 16  ;;  %v325_v22 = vrot.slane %v317_v59, %v2746_v33 }
 0x285   : > { %v341_v16 = vrot.slane %v333_v57, %v2746_v33  ;;  %v348_v61 = vrot.slane %v334_v58, %v2746_v33 }
 0x287   : > { %v350_v63 = vcombine.high %v325_v22, %v341_v16  ;;  %v366_v0 = vcombine.high %v332_v62, %v348_v61 }
 0x288   : > { %494 = vrot.lane.b32.xlu1 %v2740_v21, %s2602_s7  ;;  %v349_v21 = vcombine.low %v325_v22, %v341_v16 }
 0x289   : > { %v364_v6 = vrot.slane %v350_v63, %v2748_v40  ;;  %v380_v7 = vrot.slane %v366_v0, %v2748_v40 }
 0x28a   : > { %v357_v5 = vrot.slane %v349_v21, %v2748_v40 }
 0x28b   : > { %v382_v11 = vcombine.high %v364_v6, %v2593_v1  ;;  %v384_v13 = vcombine.high %v380_v7, %v2593_v1  ;;  %v2335_v25 = vpack.c.bf16 %v380_v7, %v364_v6 }
 0x28c   : > { %v381_v10 = vcombine.high %v357_v5, %v2593_v1 }
 0x28d   : > { %490 = vrot.lane.b32.xlu0 %v2737_v20, %s2602_s7  ;;  %v365_v20 = vcombine.low %v332_v62, %v348_v61  ;;  %v2337_v19 = vpack.c.bf16 %v384_v13, %v382_v11  ;;  %v591_v34 = vrot.slane %v2335_v25, %v2746_v33 }
 0x28f   : > { %v373_v2 = vrot.slane %v365_v20, %v2748_v40  ;;  %v616_v29 = vrot.slane %v2337_v19, %v2746_v33 }
 0x291   : > { %v383_v12 = vcombine.high %v373_v2, %v2593_v1  ;;  %v2334_v24 = vpack.c.bf16 %v373_v2, %v357_v5 }
 0x293   : > { %v2336_v18 = vpack.c.bf16 %v383_v12, %v381_v10  ;;  %v583_v32 = vrot.slane %v2334_v24, %v2746_v33 }
 0x295   : > { %v608_v28 = vrot.slane %v2336_v18, %v2746_v33  ;;  %v592_v43 = vcombine.low %v583_v32, %v591_v34 }
 0x297   : > { %v617_v39 = vcombine.low %v608_v28, %v616_v29  ;;  %v599_v48 = vrot.slane %v592_v43, %v2748_v40 }
 0x299   : > { %v624_v47 = vrot.slane %v617_v39, %v2748_v40  ;;  %v629_v60 = vshrl.u32 %v599_v48, 16 }
 0x29b   : > { %v630_v55 = vshrl.u32 %v624_v47, 16  ;;  %v628_v59 = vpack.i.b16 %v624_v47, %v599_v48  ;;  %v625_v20 = vcombine.high %v624_v47, %v2601_v35 }
 0x29d   : > { %v631_v61 = vpack.i.b16 %v630_v55, %v629_v60  ;;  %v636_v10 = vshrl.u32 %v625_v20, 16 }
 0x2d6   : > { %v938_v3 = vpop.trf.xlu1  ;;  %v874_v4 = vpop.trf.xlu0 }
 0x2d7   : > { %v994_v23 = vcombine.low %v874_v4, %v938_v3  ;;  %v600_v3 = vcombine.high %v599_v48, %v2601_v35 }
 0x2d9   : > { %v1001_v30 = vrot.slane %v994_v23, %v2746_v33  ;;  %v634_v5 = vpack.i.b16 %v625_v20, %v600_v3  ;;  %v635_v13 = vshrl.u32 %v600_v3, 16 }
 0x2da   : > { %v890_v8 = vpop.trf.xlu1  ;;  %v906_v9 = vpop.trf.xlu0 }
 0x2de   : > { %v970_v14 = vpop.trf.xlu1  ;;  %v954_v15 = vpop.trf.xlu0 }
 0x2df   : > { %v1002_v17 = vcombine.low %v906_v9, %v970_v14  ;;  %v1019_v31 = vcombine.low %v890_v8, %v954_v15 }
 0x2e1   : > { %v1009_v27 = vrot.slane %v1002_v17, %v2746_v33  ;;  %v1026_v41 = vrot.slane %v1019_v31, %v2746_v33  ;;  %v637_v17 = vpack.i.b16 %v636_v10, %v635_v13 }
 0x2e2   : > { %v922_v26 = vpop.trf.xlu0 }
 0x2e3   : > { %v1010_v37 = vcombine.low %v1001_v30, %v1009_v27 }
 0x2e5   : > { %v1017_v44 = vrot.slane %v1010_v37, %v2748_v40 }
 0x2e6   : > { %v986_v36 = vpop.trf.xlu0 }
 0x2e7   : > { %v1027_v38 = vcombine.low %v922_v26, %v986_v36  ;;  %v1047_v50 = vshrl.u32 %v1017_v44, 16  ;;  %v1018_v56 = vcombine.high %v1017_v44, %v2601_v35 }
 0x2e9   : > { %v1034_v42 = vrot.slane %v1027_v38, %v2746_v33  ;;  %v1053_v0 = vshrl.u32 %v1018_v56, 16 }
 0x2eb   : > { %v1035_v45 = vcombine.low %v1026_v41, %v1034_v42 }
 0x2ed   : > { %v1042_v46 = vrot.slane %v1035_v45, %v2748_v40 }
 0x2ef   : > { %v1046_v49 = vpack.i.b16 %v1042_v46, %v1017_v44  ;;  %v1048_v51 = vshrl.u32 %v1042_v46, 16  ;;  %v1043_v52 = vcombine.high %v1042_v46, %v2601_v35 }
 0x2f1   : > { %v1062_v53 = vsel %vm1060_vm2, %v1046_v49, 0  ;;  %v1049_v54 = vpack.i.b16 %v1048_v51, %v1047_v50  ;;  %v1052_v16 = vpack.i.b16 %v1043_v52, %v1018_v56  ;;  %v1054_v63 = vshrl.u32 %v1043_v52, 16 }
 0x2f2   : > { %v2816_v57 = vpop.permute.xlu1 %488  ;;  %2399 = vmatpush3.bf16.msra.mxu0 %v1062_v53 }
 0x2f3   : > { %v1108_v58 = vsel %vm1060_vm2, %v1049_v54, 0  ;;  %2440 = vmatprep.subr.bf16.mxu0 %v2593_v1  ;;  %v1154_v21 = vsel %vm1060_vm2, %v1052_v16, 0  ;;  %v1055_v4 = vpack.i.b16 %v1054_v63, %v1053_v0 }
 0x2f4   : > { %2405 = vmatpush3.bf16.msra.mxu1 %v1108_v58 }
 0x2f5   : > { %2401 = vmatmul.mubr.msk.bf16.vlgmr.msra.gmra.mxu0 %vm1056_vm3, %v628_v59  ;;  %2410 = vmatprep.subr.bf16.mxu1 %v2593_v1  ;;  %v1200_v7 = vsel %vm1060_vm2, %v1055_v4, 0 }
 0x2f6   : > { %v2822_v22 = vpop.permute.xlu1 %492  ;;  %2442 = vmatprep.mubr.msk.bf16.mxu0 %vm2594_vm1, %v2593_v1 }
 0x2f7   : > { %v501_v62 = vcombine.high %v2816_v57, %v2822_v22  ;;  %2407 = vmatmul.mubr.msk.bf16.vlgmr.msra.gmra.mxu1 %vm1056_vm3, %v631_v61  ;;  %v500_v6 = vcombine.low %v2816_v57, %v2822_v22 }
 0x2f8   : > { %2411 = vmatpush3.bf16.msra.mxu1 %v1154_v21  ;;  %2412 = vmatprep.mubr.msk.bf16.mxu1 %vm2594_vm1, %v2593_v1 }
 0x2f9   : > { %2416 = vmatprep.subr.bf16.mxu1 %v2593_v1  ;;  %v508_v11 = vrot.slane %v500_v6, %v2746_v33  ;;  %v515_v49 = vrot.slane %v501_v62, %v2746_v33 }
 0x2fa   : > { %v495_v2 = vpop.permute.xlu1 %494 }
 0x2ff   : > { %2413 = vmatmul.mubr.msk.bf16.vlgmr.msra.gmra.mxu1 %vm1056_vm3, %v634_v5  ;;  %v491_v8 = vpop.permute.xlu0 %490 }
 0x300   : > { %2417 = vmatpush3.bf16.msra.mxu1 %v1200_v7  ;;  %v516_v9 = vcombine.low %v491_v8, %v495_v2  ;;  %2418 = vmatprep.mubr.msk.bf16.mxu1 %vm2594_vm1, %v2593_v1  ;;  %v517_v46 = vcombine.high %v491_v8, %v495_v2 }
 0x301   : > { %2422 = vmatprep.subr.bf16.mxu1 %v2593_v1 }
 0x302   : > { %v524_v12 = vrot.slane %v516_v9, %v2746_v33  ;;  %v531_v47 = vrot.slane %v517_v46, %v2746_v33 }
 0x304   : > { %v532_v14 = vcombine.low %v508_v11, %v524_v12  ;;  %v533_v15 = vcombine.high %v508_v11, %v524_v12  ;;  %v548_v52 = vcombine.low %v515_v49, %v531_v47  ;;  %v549_v59 = vcombine.high %v515_v49, %v531_v47 }
 0x306   : > { %v540_v18 = vrot.slane %v532_v14, %v2748_v40  ;;  %v547_v48 = vrot.slane %v533_v15, %v2748_v40  ;;  %v556_v55 = vrot.slane %v548_v52, %v2748_v40  ;;  %v563_v16 = vrot.slane %v549_v59, %v2748_v40 }
 0x307   : > { %2419 = vmatmul.mubr.msk.bf16.vlgmr.msra.gmra.mxu1 %vm1056_vm3, %v637_v17 }
 0x308   : > { %v568_v19 = vpack.c.bf16 %v540_v18, %v540_v18  ;;  %2424 = vmatprep.mubr.msk.bf16.mxu1 %vm2594_vm1, %v2593_v1  ;;  %v570_v50 = vpack.c.bf16 %v547_v48, %v547_v48  ;;  %v565_v51 = vcombine.high %v547_v48, %v2593_v1  ;;  %v564_v54 = vcombine.high %v540_v18, %v2593_v1 }
 0x309   : > { %v572_v57 = vpack.c.bf16 %v556_v55, %v556_v55  ;;  %v566_v58 = vcombine.high %v556_v55, %v2593_v1  ;;  %v574_v61 = vpack.c.bf16 %v563_v16, %v563_v16  ;;  %v567_v22 = vcombine.high %v563_v16, %v2593_v1 }
 0x30a   : > { %1290 = vxpose.xlu1.c.b16.start.end [1/1] (short) (narrow) %v568_v19, 16  ;;  %v571_v53 = vpack.c.bf16 %v565_v51, %v565_v51  ;;  %v569_v56 = vpack.c.bf16 %v564_v54, %v564_v54 }
 0x30b   : > { %v573_v60 = vpack.c.bf16 %v566_v58, %v566_v58  ;;  %v575_v62 = vpack.c.bf16 %v567_v22, %v567_v22 }
 0x36c   : > { %v1298_v21 = vpop.trf.xlu1 }
 0x3b5   : > { %v1098_v23 = vpop.f32.mrf.mxu0 }
 0x3b6   : > { %v1242_v24 = vsel %vm1056_vm3, %v1098_v23, -inf }
 0x3b7   : > { %v2849_v25 = vpop.f32.mrf.mxu1  ;;  %1243 = vmax.xlane.f32.xlu1 %v1242_v24  ;;  %v2402_v26 = vpop.f32.mrf.mxu0 }
 0x3b8   : > { %v1245_v27 = vsel %vm1056_vm3, %v2849_v25, -inf }
 0x3b9   : > { %1246 = vmax.xlane.f32.xlu0 %v1245_v27  ;;  %v1101_v28 = vpop.f32.mrf.mxu0  ;;  %v2408_v29 = vpop.f32.mrf.mxu1 }
 0x3bb   : > { %v2403_v30 = vpop.f32.mrf.mxu0  ;;  %v1147_v31 = vpop.f32.mrf.mxu1 }
 0x3bd   : > { %v2409_v32 = vpop.f32.mrf.mxu1 }
 0x3bf   : > { %v2853_v34 = vpop.f32.mrf.mxu1 }
 0x3c0   : > { %v1248_v36 = vsel %vm1056_vm3, %v2853_v34, -inf }
 0x3c1   : > { %v2414_v37 = vpop.f32.mrf.mxu1  ;;  %1249 = vmax.xlane.f32.xlu1 %v1248_v36 }
 0x3c3   : > { %v1193_v38 = vpop.f32.mrf.mxu1 }
 0x3c5   : > { %v2415_v39 = vpop.f32.mrf.mxu1 }
 0x3c7   : > { %v2857_v41 = vpop.f32.mrf.mxu1 }
 0x3c8   : > { %v1251_v42 = vsel %vm1056_vm3, %v2857_v41, -inf }
 0x3c9   : > { %1252 = vmax.xlane.f32.xlu0 %v1251_v42  ;;  %v2420_v43 = vpop.f32.mrf.mxu1 }
 0x3cb   : > { %v1239_v44 = vpop.f32.mrf.mxu1 }
 0x3cd   : > { %v2421_v45 = vpop.f32.mrf.mxu1 }
 0x3ee   : > { %1322 = vxpose.xlu1.c.b16.start.end [1/1] (short) (narrow) %v570_v50, 16 }
 0x3f2   : > { %1338 = vxpose.xlu1.c.b16.start.end [1/1] (short) (narrow) %v571_v53, 16 }
 0x3f6   : > { %1306 = vxpose.xlu0.c.b16.start.end [1/1] (short) (narrow) %v569_v56, 16  ;;  %1354 = vxpose.xlu1.c.b16.start.end [1/1] (short) (narrow) %v572_v57, 16 }
 0x3fa   : > { %1370 = vxpose.xlu1.c.b16.start.end [1/1] (short) (narrow) %v573_v60, 16 }
 0x3fe   : > { %1386 = vxpose.xlu1.c.b16.start.end [1/1] (short) (narrow) %v574_v61, 16 }
 0x402   : > { %1402 = vxpose.xlu1.c.b16.start.end [1/1] (short) (narrow) %v575_v62, 16 }
 0x440   : > { %v1244_v63 = vpop.xlane.xlu1 %1243 }
 0x441   : > { %v1254_v20 = vsub.f32 %v1098_v23, %v1244_v63 }
 0x442   : > { %v1247_v7 = vpop.xlane.xlu0 %1246 }
 0x443   : > { %v1258_v0 = vmul.f32 1.442695, %v1254_v20  ;;  %v1255_v42 = vsub.f32 %v2849_v25, %v1247_v7 }
 0x445   : > { %2515 = vpow2.f32 %v1258_v0  ;;  %v1260_v48 = vmul.f32 1.442695, %v1255_v42 }
 0x447   : > { %2517 = vpow2.f32 %v1260_v48 }
 0x44a   : > { %v1250_v3 = vpop.xlane.xlu1 %1249 }
 0x44b   : > { %v1256_v49 = vsub.f32 %v2853_v34, %v1250_v3 }
 0x44d   : > { %v1262_v54 = vmul.f32 1.442695, %v1256_v49 }
 0x450   : > { %v1330_v4 = vpop.trf.xlu1 }
 0x452   : > { %v2870_v5 = vpop.eup %2515  ;;  %v1253_v9 = vpop.xlane.xlu0 %1252 }
 0x453   : > { %v1266_v6 = vsel %vm1056_vm3, %v2870_v5, 0.0  ;;  %v1257_v45 = vsub.f32 %v2857_v41, %v1253_v9 }
 0x454   : > { %1267 = vadd.xlane.f32.xlu0 %v1266_v6  ;;  %v1346_v2 = vpop.trf.xlu1  ;;  %v2518_v58 = vpop.eup %2517 }
 0x455   : > { %v1264_v51 = vmul.f32 1.442695, %v1257_v45  ;;  %v1269_v59 = vsel %vm1056_vm3, %v2518_v58, 0.0 }
 0x457   : > { %2519 = vpow2.f32 %v1264_v51 }
 0x458   : > { %v1362_v8 = vpop.trf.xlu1  ;;  %v1314_v11 = vpop.trf.xlu0  ;;  %2521 = vpow2.f32 %v1262_v54 }
 0x459   : > { %v1418_v13 = vcombine.low %v1298_v21, %v1362_v8 }
 0x45b   : > { %v1425_v19 = vrot.slane %v1418_v13, %v2746_v33 }
 0x45c   : > { %v1378_v10 = vpop.trf.xlu1 }
 0x45d   : > { %v1452_v15 = vcombine.low %v1314_v11, %v1378_v10 }
 0x45f   : > { %v1459_v24 = vrot.slane %v1452_v15, %v2746_v33 }
 0x460   : > { %v1394_v12 = vpop.trf.xlu1 }
 0x461   : > { %v1426_v14 = vcombine.low %v1330_v4, %v1394_v12 }
 0x463   : > { %v1433_v17 = vrot.slane %v1426_v14, %v2746_v33 }
 0x464   : > { %v1410_v18 = vpop.trf.xlu1  ;;  %v2520_v34 = vpop.eup %2519 }
 0x465   : > { %v1460_v23 = vcombine.low %v1346_v2, %v1410_v18  ;;  %v1434_v26 = vcombine.low %v1425_v19, %v1433_v17  ;;  %v1435_v43 = vcombine.high %v1425_v19, %v1433_v17  ;;  %v2522_v60 = vpop.eup %2521  ;;  %v1275_v16 = vsel %vm1056_vm3, %v2520_v34, 0.0 }
 0x466   : > { %v1272_v61 = vsel %vm1056_vm3, %v2522_v60, 0.0 }
 0x467   : > { %v1467_v27 = vrot.slane %v1460_v23, %v2746_v33  ;;  %v1442_v29 = vrot.slane %v1434_v26, %v2748_v40  ;;  %v1449_v50 = vrot.slane %v1435_v43, %v2748_v40 }
 0x469   : > { %v1468_v28 = vcombine.low %v1459_v24, %v1467_v27  ;;  %v1450_v36 = vcombine.high %v1442_v29, %v2601_v35  ;;  %v1469_v37 = vcombine.high %v1459_v24, %v1467_v27  ;;  %v1506_v25 = vshrl.u32 %v1449_v50, 16 }
 0x46a   : > { %v1490_v41 = vshrl.u32 %v1442_v29, 16  ;;  %v1451_v62 = vcombine.high %v1449_v50, %v2601_v35 }
 0x46b   : > { %v1476_v30 = vrot.slane %v1468_v28, %v2748_v40  ;;  %v1498_v44 = vshrl.u32 %v1450_v36, 16  ;;  %v1483_v47 = vrot.slane %v1469_v37, %v2748_v40 }
 0x46c   : > { %v1514_v20 = vshrl.u32 %v1451_v62, 16 }
 0x46d   : > { %v1488_v31 = vpack.i.b16 %v1476_v30, %v1442_v29  ;;  %v1484_v32 = vcombine.high %v1476_v30, %v2601_v35  ;;  %v1504_v52 = vpack.i.b16 %v1483_v47, %v1449_v50  ;;  %v1507_v53 = vshrl.u32 %v1483_v47, 16 }
 0x46e   : > { %v1491_v55 = vshrl.u32 %v1476_v30, 16  ;;  %v1485_v22 = vcombine.high %v1483_v47, %v2601_v35 }
 0x46f   : > { %1518 = vxpose.xlu1.c.b16.start.end [1/1] (short) (narrow) %v1488_v31, 16  ;;  %v1496_v38 = vpack.i.b16 %v1484_v32, %v1450_v36  ;;  %v1499_v39 = vshrl.u32 %v1484_v32, 16  ;;  %v1508_v56 = vpack.i.b16 %v1507_v53, %v1506_v25 }
 0x470   : > { %v1492_v57 = vpack.i.b16 %v1491_v55, %v1490_v41  ;;  %v1515_v21 = vshrl.u32 %v1485_v22, 16  ;;  %v1512_v63 = vpack.i.b16 %v1485_v22, %v1451_v62 }
 0x471   : > { %v1500_v46 = vpack.i.b16 %v1499_v39, %v1498_v44 }
 0x472   : > { %v1516_v0 = vpack.i.b16 %v1515_v21, %v1514_v20 }
 0x473   : > { %1550 = vxpose.xlu1.c.b16.start.end [1/1] (short) (narrow) %v1496_v38, 16 }
 0x477   : > { %1566 = vxpose.xlu1.c.b16.start.end [1/1] (short) (narrow) %v1500_v46, 16 }
 0x47b   : > { %1582 = vxpose.xlu1.c.b16.start.end [1/1] (short) (narrow) %v1504_v52, 16 }
 0x47f   : > { %1598 = vxpose.xlu1.c.b16.start.end [1/1] (short) (narrow) %v1508_v56, 16 }
 0x481   : > { %1534 = vxpose.xlu0.c.b16.start.end [1/1] (short) (narrow) %v1492_v57, 16 }
 0x48c   : > { %1270 = vadd.xlane.f32.xlu1 %v1269_v59 }
 0x48e   : > { %1276 = vadd.xlane.f32.xlu0 %v1275_v16 }
 0x490   : > { %1273 = vadd.xlane.f32.xlu1 %v1272_v61 }
 0x4bb   : > { %1614 = vxpose.xlu0.c.b16.start.end [1/1] (short) (narrow) %v1512_v63, 16 }
 0x4bd   : > { %1630 = vxpose.xlu1.c.b16.start.end [1/1] (short) (narrow) %v1516_v0, 16 }
 0x4d1   : > { %v1526_v8 = vpop.trf.xlu1 }
 0x4d5   : > { %v1558_v9 = vpop.trf.xlu1 }
 0x4d9   : > { %v1574_v10 = vpop.trf.xlu1 }
 0x4dd   : > { %v1268_v3 = vpop.xlane.xlu0 %1267  ;;  %v1590_v11 = vpop.trf.xlu1 }
 0x4de   : > { %2523 = vrcp.f32 %v1268_v3  ;;  %v1646_v18 = vcombine.low %v1526_v8, %v1590_v11  ;;  %v2513_v8 = vld [vmem:[%s2997_s2 + $0x8] sm:$0xff]  }
 0x4e0   : > { %v1653_v26 = vrot.slane %v1646_v18, %v2746_v33 }
 0x4e1   : > { %v1606_v12 = vpop.trf.xlu1 }
 0x4e3   : > { %v1542_v13 = vpop.trf.xlu0 }
 0x4e4   : > { %v1671_v19 = vcombine.low %v1542_v13, %v1606_v12 }
 0x4e6   : > { %v1678_v29 = vrot.slane %v1671_v19, %v2746_v33 }
 0x4eb   : > { %v2524_v4 = vpop.eup %2523 }
 0x4ec   : > { %v1279_v6 = vmul.f32 %v2524_v4, %v2870_v5 }
 0x4ee   : > { %v1286_v2 = vpack.c.bf16 %v1279_v6, %v1279_v6 }
 0x4f0   : > { %v1712_v7 = vsel %vm1056_vm3, %v1286_v2, 0 }
 0x4f1   : > { %2423 = vmatpush3.bf16.xpose.msra.mxu1 %v1712_v7 }
 0x4f2   : > { %2428 = vmatprep.subr.bf16.mxu1 %v2593_v1 }
 0x515   : > { %v1271_v14 = vpop.xlane.xlu1 %1270 }
 0x516   : > { %2525 = vrcp.f32 %v1271_v14 }
 0x517   : > { %v1277_v15 = vpop.xlane.xlu0 %1276 }
 0x518   : > { %2527 = vrcp.f32 %v1277_v15 }
 0x519   : > { %v1274_v17 = vpop.xlane.xlu1 %1273 }
 0x51a   : > { %2529 = vrcp.f32 %v1274_v17 }
 0x51d   : > { %v1622_v5 = vpop.trf.xlu0 }
 0x51e   : > { %v1654_v23 = vcombine.low %v1558_v9, %v1622_v5  ;;  %v2204_v9 = vsel %vm244_vm0, %v2513_v8, 0 }
 0x51f   : > { %v1638_v24 = vpop.trf.xlu1 }
 0x520   : > { %v1661_v27 = vrot.slane %v1654_v23, %v2746_v33  ;;  %v1679_v28 = vcombine.low %v1574_v10, %v1638_v24 }
 0x522   : > { %v1662_v30 = vcombine.low %v1653_v26, %v1661_v27  ;;  %v1686_v31 = vrot.slane %v1679_v28, %v2746_v33 }
 0x523   : > { %v2526_v32 = vpop.eup %2525 }
 0x524   : > { %v1687_v36 = vcombine.low %v1678_v29, %v1686_v31  ;;  %v1281_v37 = vmul.f32 %v2526_v32, %v2518_v58  ;;  %v1669_v39 = vrot.slane %v1662_v30, %v2748_v40 }
 0x525   : > { %v2528_v38 = vpop.eup %2527 }
 0x526   : > { %v1694_v42 = vrot.slane %v1687_v36, %v2748_v40  ;;  %v1287_v43 = vpack.c.bf16 %v1281_v37, %v1281_v37  ;;  %v1285_v45 = vmul.f32 %v2528_v38, %v2520_v34  ;;  %v1670_v51 = vcombine.high %v1669_v39, %v2601_v35 }
 0x527   : > { %v2530_v44 = vpop.eup %2529  ;;  %v1699_v25 = vshrl.u32 %v1669_v39, 16 }
 0x528   : > { %v1698_v46 = vpack.i.b16 %v1694_v42, %v1669_v39  ;;  %v1695_v47 = vcombine.high %v1694_v42, %v2601_v35  ;;  %v1758_v48 = vsel %vm1056_vm3, %v1287_v43, 0  ;;  %v1289_v49 = vpack.c.bf16 %v1285_v45, %v1285_v45 }
 0x529   : > { %v1283_v50 = vmul.f32 %v2530_v44, %v2522_v60  ;;  %v1700_v53 = vshrl.u32 %v1694_v42, 16  ;;  %v1705_v56 = vshrl.u32 %v1670_v51, 16 }
 0x52a   : > { %2425 = vmatmul.mubr.msk.bf16.vlgmr.msra.gmra.mxu1 %vm1056_vm3, %v1698_v46  ;;  %v1850_v52 = vsel %vm1056_vm3, %v1289_v49, 0  ;;  %v1706_v54 = vshrl.u32 %v1695_v47, 16  ;;  %v1704_v58 = vpack.i.b16 %v1695_v47, %v1670_v51 }
 0x52b   : > { %2429 = vmatpush3.bf16.xpose.msra.mxu1 %v1758_v48  ;;  %2430 = vmatprep.mubr.msk.bf16.mxu1 %vm2594_vm1, %v2593_v1  ;;  %v1288_v55 = vpack.c.bf16 %v1283_v50, %v1283_v50  ;;  %v1701_v41 = vpack.i.b16 %v1700_v53, %v1699_v25 }
 0x52c   : > { %2441 = vmatpush3.bf16.xpose.msra.mxu0 %v1850_v52  ;;  %2434 = vmatprep.subr.bf16.mxu1 %v2593_v1  ;;  %v1707_v57 = vpack.i.b16 %v1706_v54, %v1705_v56 }
 0x52d   : > { %v1804_v35 = vsel %vm1056_vm3, %v1288_v55, 0 }
 0x532   : > { %2431 = vmatmul.mubr.msk.bf16.vlgmr.msra.gmra.mxu1 %vm1056_vm3, %v1701_v41 }
 0x533   : > { %2435 = vmatpush3.bf16.xpose.msra.mxu1 %v1804_v35  ;;  %2443 = vmatmul.mubr.msk.bf16.vlgmr.msra.gmra.mxu0 %vm1056_vm3, %v1707_v57  ;;  %v2348_v57 = vld [vmem:[%s2998_s3] ss:$0 sm:$0xff] }
 0x534   : > { %2436 = vmatprep.mubr.msk.bf16.mxu1 %vm2594_vm1, %v2593_v1  ;;  %2446 = vmatprep.subr.bf16.mxu1 %v2593_v1 }
 0x53a   : > { %2437 = vmatmul.mubr.msk.bf16.vlgmr.msra.gmra.mxu1 %vm1056_vm3, %v1704_v58 }
 0x53b   : > { %2450 = vmatprep.mubr.msk.bf16.mxu1 %vm2594_vm1, %v2593_v1  ;;  %2447 = vmatpush3.bf16.xpose.msra.mxu1 %v2204_v9 }
 0x53c   : > { %2448 = vmatprep.subr.bf16.mxu1 %v2593_v1  ;;  %v2514_v1 = vld [vmem:[%s2997_s2] sm:$0xff]  }
 0x53d   : > { %v2201_v30 = vsel %vm244_vm0, %v2514_v1, 0 }
 0x543   : > { %2449 = vmatpush3.bf16.xpose.msra.mxu1 %v2201_v30 }
 0x5ea   : > { %v1748_v34 = vpop.f32.mrf.mxu1 }
 0x5eb   : > { %1892 = vxpose.xlu0.b32.start.end [1/1] (short) (narrow) %v1748_v34, 8 }
 0x5ec   : > { %v2426_v59 = vpop.f32.mrf.mxu1 }
 0x5ee   : > { %v1751_v60 = vpop.f32.mrf.mxu1 }
 0x5f0   : > { %v2427_v16 = vpop.f32.mrf.mxu1 }
 0x5f2   : > { %v1794_v61 = vpop.f32.mrf.mxu1 }
 0x5f3   : > { %v1886_v22 = vpop.f32.mrf.mxu0  ;;  %1924 = vxpose.xlu1.b32.start.end [1/1] (short) (narrow) %v1794_v61, 8 }
 0x5f4   : > { %v2432_v62 = vpop.f32.mrf.mxu1 }
 0x5f5   : > { %v2444_v21 = vpop.f32.mrf.mxu0 }
 0x5f6   : > { %v1797_v63 = vpop.f32.mrf.mxu1 }
 0x5f7   : > { %v1889_v20 = vpop.f32.mrf.mxu0 }
 0x5f8   : > { %v2433_v0 = vpop.f32.mrf.mxu1 }
 0x5f9   : > { %v2445_v3 = vpop.f32.mrf.mxu0 }
 0x5fa   : > { %v1840_v4 = vpop.f32.mrf.mxu1 }
 0x5fb   : > { %1956 = vxpose.xlu0.b32.start.end [1/1] (short) (narrow) %v1840_v4, 8 }
 0x5fc   : > { %v2438_v6 = vpop.f32.mrf.mxu1 }
 0x5fe   : > { %v1843_v2 = vpop.f32.mrf.mxu1 }
 0x5ff   : > { %1988 = vxpose.xlu0.b32.start.end [1/1] (short) (narrow) %v1886_v22, 8 }
 0x600   : > { %v2439_v7 = vpop.f32.mrf.mxu1 }
 0x667   : > { %v1908_v10 = vpop.trf.xlu0 }
 0x66f   : > { %v1940_v12 = vpop.trf.xlu1 }
 0x677   : > { %v1972_v11 = vpop.trf.xlu0 }
 0x678   : > { %v2020_v13 = vcombine.low %v1908_v10, %v1972_v11  ;;  %v2021_v14 = vcombine.high %v1908_v10, %v1972_v11 }
 0x67a   : > { %v2028_v5 = vrot.slane %v2020_v13, %v2746_v33  ;;  %v2035_v19 = vrot.slane %v2021_v14, %v2746_v33 }
 0x67b   : > { %v2004_v15 = vpop.trf.xlu0 }
 0x67c   : > { %v2036_v17 = vcombine.low %v1940_v12, %v2004_v15  ;;  %v2037_v18 = vcombine.high %v1940_v12, %v2004_v15 }
 0x67e   : > { %v2044_v23 = vrot.slane %v2036_v17, %v2746_v33  ;;  %v2051_v24 = vrot.slane %v2037_v18, %v2746_v33 }
 0x680   : > { %v2052_v26 = vcombine.low %v2028_v5, %v2044_v23  ;;  %v2053_v27 = vcombine.high %v2028_v5, %v2044_v23  ;;  %v2068_v28 = vcombine.low %v2035_v19, %v2051_v24  ;;  %v2069_v29 = vcombine.high %v2035_v19, %v2051_v24 }
 0x682   : > { %v2060_v31 = vrot.slane %v2052_v26, %v2748_v40  ;;  %v2067_v32 = vrot.slane %v2053_v27, %v2748_v40  ;;  %v2076_v36 = vrot.slane %v2068_v28, %v2748_v40  ;;  %v2083_v37 = vrot.slane %v2069_v29, %v2748_v40 }
 0x684   : > { %v2088_v38 = vcombine.low %v2060_v31, %v2067_v32  ;;  %v2346_v39 = vcombine.high %v2060_v31, %v2067_v32  ;;  %v2104_v42 = vcombine.low %v2076_v36, %v2083_v37  ;;  %v2347_v43 = vcombine.high %v2076_v36, %v2083_v37 }
 0x686   : > { %v2095_v44 = vrot.slane %v2088_v38, %v2746_v33  ;;  %v2103_v45 = vrot.slane %v2346_v39, %v2746_v33  ;;  %v2111_v46 = vrot.slane %v2104_v42, %v2746_v33  ;;  %v2119_v47 = vrot.slane %v2347_v43, %v2746_v33 }
 0x688   : > { %v2121_v48 = vcombine.high %v2095_v44, %v2103_v45  ;;  %v2137_v49 = vcombine.high %v2111_v46, %v2119_v47  ;;  %v2120_v50 = vcombine.low %v2095_v44, %v2103_v45  ;;  %v2136_v51 = vcombine.low %v2111_v46, %v2119_v47 }
 0x68a   : > { %v2135_v52 = vrot.slane %v2121_v48, %v2748_v40  ;;  %v2151_v53 = vrot.slane %v2137_v49, %v2748_v40  ;;  %v2128_v54 = vrot.slane %v2120_v50, %v2748_v40  ;;  %v2144_v25 = vrot.slane %v2136_v51, %v2748_v40 }
 0x68c   : > { %v2154_v55 = vcombine.low %v2135_v52, %v2151_v53  ;;  %v2153_v56 = vcombine.high %v2128_v54, %v2144_v25  ;;  %v2152_v41 = vcombine.low %v2128_v54, %v2144_v25  ;;  %v2155_v33 = vcombine.high %v2135_v52, %v2151_v53 }
 0x68e   : > { %2161 = vrot.lane.b32.xlu1 %v2154_v55, %s2603_s12  ;;  %2157 = vrot.lane.b32.xlu0 %v2153_v56, %s2604_s13  ;;  %s2537_s12 = scalar_lea.vmem %s2536_s11, 256 }
 0x68f   : > { %p2539_p1 = scmp.lt.s32.totalorder %s2537_s12, %s2531_s19 }
 0x691   : > { %p2540_p2 = por %p2539_p1, %p2538_p0 }
 0x692   : > { %2165 = vrot.lane.b32.xlu1 %v2155_v33, %s2605_s14 }
 0x693   : > { %p2541_p3 = pnand %p2540_p2, %p2534_p13 }
 0x696   : > { %2194 = vrot.lane.b32.xlu1 %v2348_v57, %s2606_s23 }
 0x700   : > { %v2162_v35 = vpop.permute.xlu1 %2161  ;;  %v2158_v40 = vpop.permute.xlu0 %2157 }
 0x701   : > { %v2168_v58 = vsel %vm1056_vm3, %v2152_v41, %v2158_v40 }
 0x702   : > { %v2170_v59 = vsel %vm2169_vm4, %v2168_v58, %v2162_v35 }
 0x704   : > { %v2166_v34 = vpop.permute.xlu1 %2165 }
 0x705   : > { %v2172_v60 = vsel %vm2171_vm5, %v2170_v59, %v2166_v34 }
 0x706   : > { %v2173_v16 = vpack.c.bf16 %v2172_v60, %v2172_v60 }
 0x708   : > { %2451 = vmatmul.mubr.msk.bf16.vlgmr.msra.gmra.mxu1 %vm244_vm0, %v2173_v16  ;;  %v2195_v61 = vpop.permute.xlu1 %2194 }
 0x7c8   : > { %v2240_v22 = vpop.f32.mrf.mxu1 }
 0x7c9   : > { %v2241_v62 = vadd.f32 %v2240_v22, %v2195_v61 }
 0x7ca   : > { %v2452_v21 = vpop.f32.mrf.mxu1 }
 0x7cb   : > { %2246 = vst.msk [vmem:[%s188_s30] sm:$0xff] %vm244_vm0, %v2241_v62 }
 0x7cc   : > { %v2243_v63 = vpop.f32.mrf.mxu1 }
 0x7cd   : > { %2544 = shalt.err (!%p2541_p3)
}
 0x7ce   : > { %s2545_s13 = scalar_lea.hbm %s2953_s8, 128  ;;  %s2549_s22 = scalar_lea.hbm %s2999_s4, 256 }
 0x7cf   : > { %p2546_p4 = scmp.ne.s32.totalorder %s2953_s8, %s2545_s13  ;;  %p2550_p9 = scmp.lt.s32.totalorder %s2953_s8, %s2999_s4 }
 0x7d0   : > { %p2551_p10 = scmp.lt.s32.totalorder %s2549_s22, %s2545_s13 }
 0x7d1   : > { %p2547_p7 = pnand %p2546_p4, %p2671_p5 }
 0x7d2   : > { %p2552_p11 = por %p2551_p10, %p2550_p9 }
 0x7d3   : > { %p2548_p8 = pneg %p2547_p7 }
 0x7d5   : > { %p2553_p12 = pnand %p2552_p11, %p2548_p8 }
 0x7d7   : > { %2556 = shalt.err (!%p2553_p12)
}
 0x7d8   : > { %2454 = dma.vmem_to_hbm [thread:$0]  (%p2671_p5), %s2955_s5, 128, %s2953_s8, %s2248_s9   ;;  %v2453_v20 = vpop.f32.mrf.mxu1 }
 0x7d9 PF: > { %p2460_p13 = scmp.ge.s32.totalorder %s2591_s18, 2  ;;  %s2273_s28 = sand.u32 1, %s2579_s15  }
 0x7da   : > { %s2274_s29 = scalar_lea.sflag [#allocation3], %s2273_s28 }
 0x7db   : > { %p2457_p0 = pnand %p2460_p13, %p2675_p6 }
 0x7dd   : > { %p2458_p1 = pneg %p2457_p0 }
 0x7df   : > { %2574 = dma.done.wait (%p2458_p1), %s2274_s29, 128  }
 0x7e0   : > { %2576 = vsyncadd (%p2458_p1), %s2274_s29, 4294967168  ;;  %p14_p2 = scmp.ge.s32.totalorder %s2658_s21, 4   ;;  %s3002_s15 = smov %s2583_s16 }
 0x7e1   : > { %s3003_s16 = smov %s2587_s17  ;;  %s3004_s17 = smov %s2669_s24 }
 0x7e2   : > { %s3005_s18 = smov %s2658_s21  ;;  %16 = sbr.rel (!%p14_p2) target bundleno = 3 (0x3), region = 71 }
 0x7e7   :  { %2279 = vsyncpa [#allocation3], 1 }
 0x7e8   :  { %2281 = vsyncpa [#allocation3 + $0x1], 1 }

</bundles_post_ra>
